<compile_context>
chip_gen: v7x
topology: tpu7x:2x2x1
jax: 0.10.0
libtpu: 0.0.40
codegen_flags: <defaults>
</compile_context>

<pallas_src>
import functools

import jax
import jax.numpy as jnp
from jax.experimental import pallas as pl
from jax.experimental.pallas import tpu as pltpu

_BN_EPS = 1e-5


# ---------------------------------------------------------------------------
# One-time probe of pltpu.roll's rotation convention so the shift sign used in
# the kernel is robust across jax versions.  Returns True iff
#   pltpu.roll(x, s, a) == np.roll(x, s, a)   (i.e. out[i] = x[i - s]).
# ---------------------------------------------------------------------------
@functools.lru_cache(maxsize=None)
def _roll_is_np_convention() -> bool:
    def probe(x_ref, o_ref):
        o_ref[...] = pltpu.roll(x_ref[...], 1, 1)

    x = jnp.arange(8 * 128, dtype=jnp.float32).reshape(8, 128)
    y = pl.pallas_call(
        probe, out_shape=jax.ShapeDtypeStruct((8, 128), jnp.float32))(x)
    return bool(y[0, 1] == x[0, 0])


# ---------------------------------------------------------------------------
# Fused Block kernel (one image per grid step, channel-major lane-dense layout)
# ---------------------------------------------------------------------------
def _block_kernel(x_ref, *refs, H, W, dilation, relu_flags, has_skip, roll_np):
    """Fused Xception Block on one image.

    x_ref : (Cin, H*W)  channel-major, lane-dense image
    refs  : per sepconv (BN pre-folded): dw (C,9), pw (Cout,Cin), bias (Cout,1)
            then, if has_skip: w_skip (Cout,Cin), bias_skip (Cout,1)
            last ref is the output (Cout, H*W).
    """
    o_ref = refs[-1]
    wrefs = refs[:-1]
    P = H * W

    # ---- hoisted per-tap boundary masks (zero padding as lane-roll + mask) ----
    lane = jax.lax.broadcasted_iota(jnp.int32, (1, P), 1)
    hh = lane // W
    ww = lane % W
    masks = {}
    for kh in range(3):
        for kw in range(3):
            dh = (kh - 1) * dilation
            dv = (kw - 1) * dilation
            conds = []
            if dh > 0:
                conds.append(hh < H - dh)
            elif dh < 0:
                conds.append(hh >= -dh)
            if dv > 0:
                conds.append(ww < W - dv)
            elif dv < 0:
                conds.append(ww >= -dv)
            m = None
            for c in conds:
                m = c if m is None else (m & c)
            masks[(kh, kw)] = None if m is None else m.astype(jnp.float32)

    def pointwise(w, h_in, bias):
        # (Cout, Cin) x (Cin, P) as Cin broadcast-MACs on the VPU, plus per-row bias
        # (MXU would be <1% occupied at C <= 8).
        out = None
        for ci in range(h_in.shape[0]):
            term = w[:, ci:ci + 1] * h_in[ci:ci + 1, :]
            out = term if out is None else out + term
        return out + bias

    x0 = x_ref[...].astype(jnp.float32)            # (Cin, P)
    h = x0

    wi = 0
    for r in range(len(relu_flags)):
        dw = wrefs[wi][...]                        # (C, 9)   BN-folded depthwise
        pw = wrefs[wi + 1][...]                    # (Cout,C) BN-folded pointwise
        bias = wrefs[wi + 2][...]                  # (Cout,1) folded bias
        wi += 3

        if relu_flags[r]:
            h = jnp.maximum(h, 0.0)

        # depthwise 3x3; zero padding realized as lane rolls + boundary masks
        acc = None
        for kh in range(3):
            for kw in range(3):
                delta = (kh - 1) * dilation * W + (kw - 1) * dilation
                if delta == 0:
                    tap = h
                else:
                    shift = (-delta) % P if roll_np else delta % P
                    tap = pltpu.roll(h, shift, 1)
                m = masks[(kh, kw)]
                if m is not None:
                    tap = tap * m
                term = dw[:, kh * 3 + kw:kh * 3 + kw + 1] * tap
                acc = term if acc is None else acc + term

        h = pointwise(pw, acc, bias)               # 1x1 conv (+ both BNs folded in)

    if has_skip:
        sk = pointwise(wrefs[wi][...], x0, wrefs[wi + 1][...])
    else:
        sk = x0                                    # identity skip (inplanes==planes, stride==1)

    o_ref[...] = (h + sk).astype(o_ref.dtype)


# ---------------------------------------------------------------------------
# Wrapper (folds eval-mode BN into the conv weights, then calls the fused kernel)
# ---------------------------------------------------------------------------
def block_forward(x_nchw, params):
    """Run the fused Block kernel on an NCHW float32 input."""
    N, Cin, H, W = x_nchw.shape
    P = H * W
    has_skip = params["skip"] is not None
    Cout = params["skip"]["w"].shape[0] if has_skip else Cin

    # channel-major, lane-dense view: pure reshape of the NCHW tensor
    x_flat = x_nchw.astype(jnp.float32).reshape(N, Cin, P)

    args = []
    in_specs = [pl.BlockSpec((None, Cin, P), lambda n: (n, 0, 0))]

    def add(arr):
        arr = jnp.asarray(arr, jnp.float32)
        args.append(arr)
        in_specs.append(pl.BlockSpec(arr.shape, lambda n: (0, 0)))

    # Fold BN(scale,shift) into the conv weights (exact for eval-mode affine BN):
    #   BN_pw(pw @ BN_dw(dwconv(h))) = (pw*s_pw) @ ((dw*s_dw) * taps) + (pw*s_pw)@b_dw + b_pw
    for sc in params["seps"]:
        c = sc["dw"].shape[0]
        dw_f = sc["dw"].reshape(c, 9) * sc["bn_dw_s"]                 # (c,9) * (c,1)
        pw_f = sc["pw"] * sc["bn_pw_s"]                               # (cout,c) * (cout,1)
        bias = pw_f @ sc["bn_dw_b"] + sc["bn_pw_b"]                   # (cout,1)
        add(dw_f)
        add(pw_f)
        add(bias)
    if has_skip:
        add(params["skip"]["w"] * params["skip"]["bn_s"])
        add(params["skip"]["bn_b"])

    kern = functools.partial(
        _block_kernel, H=H, W=W, dilation=params["dilation"],
        relu_flags=tuple(sc["apply_relu"] for sc in params["seps"]),
        has_skip=has_skip, roll_np=_roll_is_np_convention())

    out = pl.pallas_call(
        kern,
        out_shape=jax.ShapeDtypeStruct((N, Cout, P), jnp.float32),
        grid=(N,),
        in_specs=in_specs,
        out_specs=pl.BlockSpec((None, Cout, P), lambda n: (n, 0, 0)),
        compiler_params=pltpu.CompilerParams(
            dimension_semantics=("parallel",)),   # N>=2 images -> both v7x TensorCores busy
    )(x_flat, *args)
    return out.reshape(N, Cout, H, W)


# ---------------------------------------------------------------------------
# Parameter construction (mirrors the module __init__ / _init_weight, eval-mode BN)
# ---------------------------------------------------------------------------
def _kaiming_normal(key, shape, fan_in):
    return (2.0 / fan_in) ** 0.5 * jax.random.normal(key, shape, jnp.float32)


def _bn_identity(c):
    # eval-mode BN with gamma=1, beta=0, running_mean=0, running_var=1
    scale = jnp.full((c, 1), 1.0 / (1.0 + _BN_EPS) ** 0.5, jnp.float32)
    shift = jnp.zeros((c, 1), jnp.float32)
    return scale, shift


def make_block_params(key, inplanes, planes, reps, *, dilation=1,
                      start_with_relu=True, grow_first=True):
    """Parameters for Block(inplanes, planes, reps, stride=1, dilation,
    start_with_relu, grow_first, is_last=False), in eval mode."""
    if grow_first:
        chans = [(inplanes, planes)] + [(planes, planes)] * (reps - 1)
    else:
        chans = [(inplanes, inplanes)] * (reps - 1) + [(inplanes, planes)]
    seps = []
    for i, (cin, cout) in enumerate(chans):
        key, k_dw, k_pw = jax.random.split(key, 3)
        s1, b1 = _bn_identity(cin)
        s2, b2 = _bn_identity(cout)
        seps.append(dict(
            dw=_kaiming_normal(k_dw, (cin, 3, 3), fan_in=9),   # depthwise: fan_in = 1*3*3
            pw=_kaiming_normal(k_pw, (cout, cin), fan_in=cin),  # 1x1 pointwise
            bn_dw_s=s1, bn_dw_b=b1, bn_pw_s=s2, bn_pw_b=b2,
            apply_relu=bool(start_with_relu or i > 0),
        ))
    skip = None
    if planes != inplanes:                                      # stride==1 case
        key, k_sk = jax.random.split(key)
        ss, sb = _bn_identity(planes)
        skip = dict(w=_kaiming_normal(k_sk, (planes, inplanes), fan_in=inplanes),
                    bn_s=ss, bn_b=sb)
    return dict(seps=seps, skip=skip, dilation=dilation)


# ---------------------------------------------------------------------------
# Pure-JAX reference (lax.conv, un-folded BN) for correctness validation
# ---------------------------------------------------------------------------
def _reference_block(x_nchw, params):
    dilation = params["dilation"]

    def dwconv(x, dw):                      # dw: (C, 3, 3), depthwise (groups=C)
        c = x.shape[1]
        return jax.lax.conv_general_dilated(
            x, dw[:, None, :, :], window_strides=(1, 1),
            padding=((dilation, dilation), (dilation, dilation)),
            rhs_dilation=(dilation, dilation),
            dimension_numbers=("NCHW", "OIHW", "NCHW"),
            feature_group_count=c)

    def pwconv(x, w):                       # w: (Cout, Cin)
        return jax.lax.conv_general_dilated(
            x, w[:, :, None, None], window_strides=(1, 1), padding="VALID",
            dimension_numbers=("NCHW", "OIHW", "NCHW"))

    def bn(x, s, b):
        return x * s.reshape(1, -1, 1, 1) + b.reshape(1, -1, 1, 1)

    h = x_nchw
    for sc in params["seps"]:
        if sc["apply_relu"]:
            h = jnp.maximum(h, 0.0)
        h = bn(dwconv(h, sc["dw"]), sc["bn_dw_s"][:, 0], sc["bn_dw_b"][:, 0])
        h = bn(pwconv(h, sc["pw"]), sc["bn_pw_s"][:, 0], sc["bn_pw_b"][:, 0])
    if params["skip"] is not None:
        sk = bn(pwconv(x_nchw, params["skip"]["w"]),
                params["skip"]["bn_s"][:, 0], params["skip"]["bn_b"][:, 0])
    else:
        sk = x_nchw
    return h + sk


# ---------------------------------------------------------------------------
if __name__ == "__main__":
    key = jax.random.PRNGKey(0)
    N, inplanes, planes, H, W = 2, 4, 8, 16, 16
    reps = 2

    k_x, k_p = jax.random.split(key)
    x = jax.random.normal(k_x, (N, inplanes, H, W), jnp.float32)   # NCHW, as in PyTorch
    params = make_block_params(k_p, inplanes, planes, reps, dilation=1)

    out = block_forward(x, params)
    jax.block_until_ready(out)
    assert out.shape == (N, planes, H, W)

    ref = _reference_block(x, params)
    err = float(jnp.max(jnp.abs(out - ref)))
    assert err < 1e-3, f"kernel/reference mismatch: max abs err = {err}"

    print("KERNEL_OK")
</pallas_src>

<mosaic_0001>
module attributes {stable_mosaic.version = 11 : i64} {
  func.func @probe(%arg0: memref<8x128xf32, #tpu.memory_space<vmem>>, %arg1: memref<8x128xf32, #tpu.memory_space<vmem>>) attributes {dimension_semantics = [], scalar_prefetch = 0 : i64, scratch_operands = 0 : i64, tpu.core_type = #tpu.core_type<tc>} {
    %c0 = arith.constant 0 : index
    %c0_0 = arith.constant 0 : index
    %0 = vector.load %arg0[%c0, %c0_0] : memref<8x128xf32, #tpu.memory_space<vmem>>, vector<8x128xf32>
    %c1_i32 = arith.constant 1 : i32
    %1 = tpu.dynamic_rotate %0 by %c1_i32 dim 1 : vector<8x128xf32>, i32 -> vector<8x128xf32>
    %c0_1 = arith.constant 0 : index
    %c0_2 = arith.constant 0 : index
    %2 = vector.load %arg1[%c0_1, %c0_2] : memref<8x128xf32, #tpu.memory_space<vmem>>, vector<8x128xf32>
    tpu.vector_store %arg1[%c0_1, %c0_2], %1 {strides = array<i32>} : memref<8x128xf32, #tpu.memory_space<vmem>>, vector<8x128xf32>,
    return
  }
}

</mosaic_0001>

<bundles_post_ra>
// kernel: tpu_custom_call.1
= control target key start
LH: loop header
LB: loop body
LE: loop exit
PB: predicated region body
PF: predicated region fallthrough
CT: control target
= control target key end

     0   :  { %6 = vsyncpa [#allocation3], 0  ;;  %s128_s0 = inlined_call_operand.hbm [shape: f32[8,128], index: 0, kind: input, shape index: {}]   ;;  %s129_s1 = inlined_call_operand.hbm [shape: f32[8,128], index: 1, kind: output, shape index: {}]  }
   0x1   :  { %7 = vsyncpa [#allocation4], 0  ;;  %s91_s6 = smov [#allocation2]   ;;  %s43_s10 = scalar_lea.hbm %s128_s0, 128 }
   0x2   :  { %s14_s7 = sshll.u32 %s91_s6, 4  ;;  %p44_p0 = scmp.ne.s32.totalorder %s128_s0, %s43_s10  ;;  %s15_s7 = int_to_ptr.vmem [resolvable:$true] %s14_s7 }
   0x3   :  { %p47_p1 = scmp.lt.u32.totalorder %s43_s10, %s128_s0 }
   0x5   :  { %p49_p2 = pnand %p47_p1, %p44_p0 }
   0x7   :  { %52 = shalt.err (!%p49_p2)
}
   0x8   :  { %s53_s15 = scalar_lea.vmem %s15_s7, 128  ;;  %p58_p4 = scmp.lt.s32.totalorder %s15_s7, %s15_s7 }
   0x9   :  { %p54_p3 = scmp.ne.s32.totalorder %s15_s7, %s53_s15  ;;  %p59_p5 = scmp.lt.s32.totalorder %s53_s15, %s53_s15 }
   0xb   :  { %p60_p6 = por %p59_p5, %p58_p4 }
   0xd   :  { %p61_p7 = pnand %p60_p6, %p54_p3 }
   0xf   :  { %64 = shalt.err (!%p61_p7)
}
  0x10   :  { %17 = dma.hbm_to_vmem [thread:$0]  %s128_s0, 128, %s15_s7, [#allocation3]  }
  0x11   :  { %87 = dma.done.wait [#allocation3], 128  }
  0x12   :  { %88 = vsyncadd [#allocation3], 4294967168  ;;  %v21_v0 = vld [vmem:[#allocation2] sm:$0xff]  ;;  %s92_s18 = smov 1   ;;  %s93_s19 = smov [#allocation5]  }
  0x13   :  { %22 = vrot.lane.b32.xlu0 %v21_v0, %s92_s18  ;;  %s31_s20 = sshll.u32 %s93_s19, 4  ;;  %s32_s20 = int_to_ptr.vmem [resolvable:$true] %s31_s20 }
  0x14   :  { %s65_s21 = scalar_lea.vmem %s32_s20, 128  ;;  %p70_p9 = scmp.lt.s32.totalorder %s32_s20, %s32_s20 }
  0x15   :  { %p66_p8 = scmp.ne.s32.totalorder %s32_s20, %s65_s21  ;;  %p71_p10 = scmp.lt.s32.totalorder %s65_s21, %s65_s21 }
  0x17   :  { %p72_p11 = por %p71_p10, %p70_p9 }
  0x19   :  { %p73_p12 = pnand %p72_p11, %p66_p8 }
  0x85   :  { %v23_v1 = vpop.permute.xlu0 %22 }
  0x86   :  { %24 = vst [vmem:[#allocation5] sm:$0xff] %v23_v1 }
  0x87   :  { %76 = shalt.err (!%p73_p12)
}
  0x88   :  { %s77_s0 = scalar_lea.hbm %s129_s1, 128 }
  0x89   :  { %p78_p13 = scmp.ne.s32.totalorder %s129_s1, %s77_s0  ;;  %p81_p0 = scmp.lt.u32.totalorder %s77_s0, %s129_s1 }
  0x8b   :  { %p83_p1 = pnand %p81_p0, %p78_p13 }
  0x8d   :  { %86 = shalt.err (!%p83_p1)
}
  0x8e   :  { %34 = dma.vmem_to_hbm [thread:$0]  %s32_s20, 128, %s129_s1, [#allocation4]  }
  0x8f   :  { %89 = dma.done.wait [#allocation4], 128  }
  0x90   :  { %90 = vsyncadd [#allocation4], 4294967168 }
  0x91   :  { %38 = vsyncpa [#allocation3], 1 }
  0x92   :  { %39 = vsyncpa [#allocation4], 1 }

</bundles_post_ra>
